<compile_context>
chip_gen: v7x
topology: tpu7x:2x2x1
jax: 0.10.0
libtpu: 0.0.40
codegen_flags: <defaults>
</compile_context>

<pallas_src>
import numpy as np
import jax
import jax.numpy as jnp
from jax.experimental import pallas as pl
from jax.experimental.pallas import tpu as pltpu

FEATURE = 8            # feature_size (module default)
C_IN = 3
H, W = 5, 7            # required so the encoder output is (B, F, 1, 1)
KH1, KW1 = 3, 5
KH2, KW2 = 3, 3
H1, W1 = H - KH1 + 1, W - KW1 + 1          # 3, 3  (after first conv)
NPOS = H1 * W1                             # 9 output positions of conv1
IN_FLAT = C_IN * H * W                     # 105
D1_FLAT = FEATURE * KH1 * KW1              # 120  (deconv1 output, flattened)
OUT_FLAT = C_IN * H * W                    # 105  (deconv2 output, flattened)
LANE = 128                                 # lane-dense output width (padded)


def _silu(x):
    # x * sigmoid(x); sigmoid via EUP tanh (frees VPU divide slots).
    return 0.5 * x * (jnp.tanh(0.5 * x) + 1.0)


def _fwd_kernel(x_ref, act_ref,
                w1_ref, b1_ref, w2_ref, b2_ref,          # fused encoders
                wt1_ref, wt1a_ref, bt1_ref,              # transition linear 1
                wt2_ref, bt2_ref, wt3_ref, bt3_ref,      # transition linear 2,3
                wd1a_ref, wd1b_ref, bd1_ref,             # decoder deconv 1 (split)
                md2_ref, bd2_ref,                        # decoder deconv 2 (dense)
                enc_out_ref, ns_out_ref, s_out_ref):
    f32 = jnp.float32
    tb = ns_out_ref.shape[0]

    x = x_ref[...]                                       # (TB, 105)
    # Both encoders fused: conv1 -> (TB, 144), conv2 block-diag -> (TB, 16).
    h1 = _silu(jnp.dot(x, w1_ref[...], preferred_element_type=f32) + b1_ref[...])
    enc_both = _silu(jnp.dot(h1, w2_ref[...], preferred_element_type=f32)
                     + b2_ref[...])                      # cols [0:F)=enc, [F:2F)=rec

    # Transition model on cat([enc, action]); rec rows of wt1 are zero so the
    # fused enc_both can be fed directly (no slicing / concat).
    act = act_ref[...]                                   # (TB, 1)
    t1 = _silu(jnp.dot(enc_both, wt1_ref[...], preferred_element_type=f32)
               + act * wt1a_ref[...] + bt1_ref[...])
    t2 = _silu(jnp.dot(t1, wt2_ref[...], preferred_element_type=f32) + bt2_ref[...])
    pred = _silu(jnp.dot(t2, wt3_ref[...], preferred_element_type=f32)
                 + bt3_ref[...])                         # (TB, 128), cols >= F are 0
    enc_out_ref[...] = pred

    # Decoder deconv1 on a 1x1 input == matmul; [pred | rec] halves of the
    # weight are zero-padded so no concat is needed.
    rec_d1 = jnp.dot(enc_both, wd1b_ref[...], preferred_element_type=f32) + bd1_ref[...]
    d1_ns = _silu(rec_d1 + jnp.dot(pred, wd1a_ref[...], preferred_element_type=f32))
    d1_s = _silu(rec_d1)

    # Single shared deconv2 matmul for both branches (largest RHS reused once).
    d1 = jnp.concatenate([d1_ns, d1_s], axis=0)          # (2*TB, 120)
    dec = jnp.dot(d1, md2_ref[...], preferred_element_type=f32) + bd2_ref[...]
    ns_out_ref[...] = dec[:tb]
    s_out_ref[...] = dec[tb:]


# ----------------------------- glue (plain JAX) -----------------------------

def init_params(key, f=FEATURE):
    ks = jax.random.split(key, 18)

    def u(k, shape, fan_in):
        bound = 1.0 / np.sqrt(fan_in)
        return jax.random.uniform(k, shape, jnp.float32, -bound, bound)

    p = {}
    # state_encoder
    p['e1_w1'] = u(ks[0], (f, C_IN, KH1, KW1), C_IN * KH1 * KW1)
    p['e1_b1'] = u(ks[1], (f,), C_IN * KH1 * KW1)
    p['e1_w2'] = u(ks[2], (f, f, KH2, KW2), f * KH2 * KW2)
    p['e1_b2'] = u(ks[3], (f,), f * KH2 * KW2)
    # state_encoder2
    p['e2_w1'] = u(ks[4], (f, C_IN, KH1, KW1), C_IN * KH1 * KW1)
    p['e2_b1'] = u(ks[5], (f,), C_IN * KH1 * KW1)
    p['e2_w2'] = u(ks[6], (f, f, KH2, KW2), f * KH2 * KW2)
    p['e2_b2'] = u(ks[7], (f,), f * KH2 * KW2)
    # transition_model (torch Linear weight is (out, in))
    p['t1_w'] = u(ks[8], (2 * f, f + 1), f + 1)
    p['t1_b'] = u(ks[9], (2 * f,), f + 1)
    p['t2_w'] = u(ks[10], (2 * f, 2 * f), 2 * f)
    p['t2_b'] = u(ks[11], (2 * f,), 2 * f)
    p['t3_w'] = u(ks[12], (f, 2 * f), 2 * f)
    p['t3_b'] = u(ks[13], (f,), 2 * f)
    # state_decoder (ConvTranspose2d weight is (in, out, kh, kw))
    p['d1_w'] = u(ks[14], (2 * f, f, KH1, KW1), 2 * f)
    p['d1_b'] = u(ks[15], (f,), 2 * f)
    p['d2_w'] = u(ks[16], (f, C_IN, KH2, KW2), f)
    p['d2_b'] = u(ks[17], (C_IN,), f)
    return p


def pack_params(p, f=FEATURE):
    """Fold all convs into dense operators (done once, off the hot path)."""

    def conv1_op(w):
        # Dense operator for the (3,5) conv on the NCHW-flattened input:
        # (105) -> (NPOS*f), column layout = pos*f + out_channel.
        w = np.asarray(w, np.float32)
        M = np.zeros((IN_FLAT, NPOS * f), np.float32)
        for oh in range(H1):
            for ow in range(W1):
                pos = oh * W1 + ow
                for c in range(C_IN):
                    for kh in range(KH1):
                        for kw in range(KW1):
                            M[c * H * W + (oh + kh) * W + (ow + kw),
                              pos * f:(pos + 1) * f] = w[:, c, kh, kw]
        return M

    def conv2_op(w):
        # (NPOS*f) -> (f); row layout matches conv1_op column layout.
        w = np.asarray(w, np.float32)
        M = np.zeros((NPOS * f, f), np.float32)
        for kh in range(KH2):
            for kw in range(KW2):
                pos = kh * KW2 + kw
                M[pos * f:(pos + 1) * f, :] = w[:, :, kh, kw].T   # [ci, co]
        return M

    ops = {}
    # both encoders fused along the output axis / block-diagonal.
    ops['w1'] = jnp.asarray(np.concatenate(
        [conv1_op(p['e1_w1']), conv1_op(p['e2_w1'])], axis=1))            # (105, 144)
    ops['b1'] = jnp.asarray(np.concatenate(
        [np.tile(np.asarray(p['e1_b1'], np.float32), NPOS),
         np.tile(np.asarray(p['e2_b1'], np.float32), NPOS)])[None, :])    # (1, 144)
    w2 = np.zeros((2 * NPOS * f, 2 * f), np.float32)
    w2[:NPOS * f, :f] = conv2_op(p['e1_w2'])
    w2[NPOS * f:, f:] = conv2_op(p['e2_w2'])
    ops['w2'] = jnp.asarray(w2)                                           # (144, 16)
    ops['b2'] = jnp.asarray(np.concatenate(
        [np.asarray(p['e1_b2'], np.float32),
         np.asarray(p['e2_b2'], np.float32)])[None, :])                   # (1, 16)

    # transition (torch Linear weight is (out, in)); zero-pad the rec rows so
    # the fused (enc|rec) activation can be used directly.
    wt1_full = np.asarray(p['t1_w'], np.float32).T                        # (f+1, 2f)
    wt1 = np.zeros((2 * f, 2 * f), np.float32)
    wt1[:f, :] = wt1_full[:f]
    ops['wt1'] = jnp.asarray(wt1)                                         # (16, 16)
    ops['wt1a'] = jnp.asarray(wt1_full[f:f + 1])                          # (1, 16)
    ops['bt1'] = jnp.asarray(np.asarray(p['t1_b'], np.float32)[None, :])
    ops['wt2'] = jnp.asarray(np.asarray(p['t2_w'], np.float32).T)         # (16, 16)
    ops['bt2'] = jnp.asarray(np.asarray(p['t2_b'], np.float32)[None, :])
    wt3 = np.zeros((2 * f, LANE), np.float32)                             # lane-dense pred
    wt3[:, :f] = np.asarray(p['t3_w'], np.float32).T
    ops['wt3'] = jnp.asarray(wt3)                                         # (16, 128)
    bt3 = np.zeros((1, LANE), np.float32)
    bt3[0, :f] = np.asarray(p['t3_b'], np.float32)
    ops['bt3'] = jnp.asarray(bt3)

    # decoder deconv1 on 1x1 input == matmul with (2F, F*15) weight; split into
    # pred / rec halves, zero-padded to the padded activation widths.
    wd1m = np.asarray(p['d1_w'], np.float32).reshape(2 * f, D1_FLAT)
    wd1a = np.zeros((LANE, D1_FLAT), np.float32)
    wd1a[:f] = wd1m[:f]
    ops['wd1a'] = jnp.asarray(wd1a)                                       # (128, 120)
    wd1b = np.zeros((2 * f, D1_FLAT), np.float32)
    wd1b[f:] = wd1m[f:]
    ops['wd1b'] = jnp.asarray(wd1b)                                       # (16, 120)
    ops['bd1'] = jnp.asarray(
        np.repeat(np.asarray(p['d1_b'], np.float32), KH1 * KW1)[None, :])  # (1, 120)

    # decoder deconv2 as a dense linear operator (120, 128); last cols are zero
    # padding so the output store is lane-dense.
    wd2 = np.asarray(p['d2_w'], np.float32)
    M = np.zeros((D1_FLAT, LANE), np.float32)
    for ci in range(f):
        for i in range(KH1):          # deconv1 output spatial = 3x5
            for j in range(KW1):
                for co in range(C_IN):
                    for kh in range(KH2):
                        for kw in range(KW2):
                            M[ci * (KH1 * KW1) + i * KW1 + j,
                              co * (H * W) + (i + kh) * W + (j + kw)] += wd2[ci, co, kh, kw]
    ops['md2'] = jnp.asarray(M)                                           # (120, 128)
    bd2 = np.zeros((1, LANE), np.float32)
    bd2[0, :OUT_FLAT] = np.repeat(np.asarray(p['d2_b'], np.float32), H * W)
    ops['bd2'] = jnp.asarray(bd2)
    return ops


_PARAM_ORDER = ['w1', 'b1', 'w2', 'b2',
                'wt1', 'wt1a', 'bt1', 'wt2', 'bt2', 'wt3', 'bt3',
                'wd1a', 'wd1b', 'bd1', 'md2', 'bd2']


def forward(ops, state, action):
    B = state.shape[0]
    x = state.astype(jnp.float32).reshape(B, IN_FLAT)     # NCHW flatten -> (B, 105)
    act = action.astype(jnp.float32)

    # Batch tile: full batch if small; multiple of 8 tiles for large batches so
    # the parallel grid axis shards across TensorCores and pipelines DMA.
    TB = B if B <= 512 else 512
    assert B % TB == 0, "large batches must be a multiple of the 512 batch tile"
    grid = (B // TB,)

    def full_spec(arr):
        zeros = (0,) * arr.ndim
        return pl.BlockSpec(arr.shape, lambda i: zeros)

    weights = [ops[k] for k in _PARAM_ORDER]
    in_specs = ([pl.BlockSpec((TB, IN_FLAT), lambda i: (i, 0)),
                 pl.BlockSpec((TB, 1), lambda i: (i, 0))]
                + [full_spec(w) for w in weights])
    out_spec = pl.BlockSpec((TB, LANE), lambda i: (i, 0))

    # Advisory cost estimate so XLA can schedule around this tiny kernel.
    flops = 2 * B * (IN_FLAT * 2 * NPOS * FEATURE        # fused conv1
                     + 2 * NPOS * FEATURE * 2 * FEATURE  # fused conv2
                     + 2 * FEATURE * 2 * FEATURE * 2     # transition 1,2
                     + 2 * FEATURE * LANE                # transition 3
                     + 2 * FEATURE * D1_FLAT             # deconv1 rec half
                     + LANE * D1_FLAT                    # deconv1 pred half
                     + 2 * D1_FLAT * LANE)               # shared deconv2
    transcendentals = B * (2 * NPOS * FEATURE + 2 * FEATURE + 2 * FEATURE
                           + 2 * FEATURE + LANE + 2 * D1_FLAT)
    weight_bytes = sum(int(np.prod(w.shape)) for w in weights) * 4
    bytes_accessed = weight_bytes + 4 * (B * IN_FLAT + B + 3 * B * LANE)
    cost = pl.CostEstimate(flops=int(flops), transcendentals=int(transcendentals),
                           bytes_accessed=int(bytes_accessed))

    enc, ns, s = pl.pallas_call(
        _fwd_kernel,
        out_shape=(jax.ShapeDtypeStruct((B, LANE), jnp.float32),
                   jax.ShapeDtypeStruct((B, LANE), jnp.float32),
                   jax.ShapeDtypeStruct((B, LANE), jnp.float32)),
        grid=grid,
        in_specs=in_specs,
        out_specs=(out_spec, out_spec, out_spec),
        compiler_params=pltpu.CompilerParams(dimension_semantics=("parallel",)),
        cost_estimate=cost,
    )(x, act, *weights)

    return {'next_state_encoding': enc[:, :FEATURE],
            'next_state': ns[:, :OUT_FLAT].reshape(B, C_IN, H, W),
            'state': s[:, :OUT_FLAT].reshape(B, C_IN, H, W)}


# ------------------------- pure-JAX reference check -------------------------

def reference_forward(p, state, action):
    hi = jax.lax.Precision.HIGHEST

    def silu(x):
        return x * jax.nn.sigmoid(x)

    def conv(x, w, b):
        y = jax.lax.conv_general_dilated(x, w, (1, 1), 'VALID',
                                         dimension_numbers=('NCHW', 'OIHW', 'NCHW'),
                                         precision=hi)
        return y + b[None, :, None, None]

    def deconv(x, w, b):
        Bb, Ci, Hh, Ww = x.shape
        _, Co, Kh, Kw = w.shape
        out = jnp.zeros((Bb, Co, Hh + Kh - 1, Ww + Kw - 1), x.dtype)
        for kh in range(Kh):
            for kw in range(Kw):
                out = out.at[:, :, kh:kh + Hh, kw:kw + Ww].add(
                    jnp.einsum('bchw,cd->bdhw', x, w[:, :, kh, kw], precision=hi))
        return out + b[None, :, None, None]

    B = state.shape[0]
    enc = silu(conv(silu(conv(state, p['e1_w1'], p['e1_b1'])),
                    p['e1_w2'], p['e1_b2'])).reshape(B, -1)
    rec = silu(conv(silu(conv(state, p['e2_w1'], p['e2_b1'])),
                    p['e2_w2'], p['e2_b2'])).reshape(B, -1)
    sa = jnp.concatenate([enc, action], axis=1)
    t = silu(jnp.dot(sa, p['t1_w'].T, precision=hi) + p['t1_b'])
    t = silu(jnp.dot(t, p['t2_w'].T, precision=hi) + p['t2_b'])
    pred = silu(jnp.dot(t, p['t3_w'].T, precision=hi) + p['t3_b'])

    def decode(z):
        z = z[:, :, None, None]
        d1 = silu(deconv(z, p['d1_w'], p['d1_b']))
        return deconv(d1, p['d2_w'], p['d2_b'])

    return {'next_state_encoding': pred,
            'next_state': decode(jnp.concatenate([pred, rec], axis=1)),
            'state': decode(jnp.concatenate([jnp.zeros_like(pred), rec], axis=1))}


if __name__ == "__main__":
    key = jax.random.PRNGKey(0)
    kp, ks, ka = jax.random.split(key, 3)

    params = init_params(kp)
    ops = pack_params(params)

    B = 8
    state = jax.random.normal(ks, (B, C_IN, H, W), jnp.float32)
    action = jax.random.normal(ka, (B, 1), jnp.float32)

    out = forward(ops, state, action)
    jax.block_until_ready(out)

    ref = reference_forward(params, state, action)
    for k in ('next_state_encoding', 'next_state', 'state'):
        # slightly loosened vs 1e-3 to leave margin for the EUP tanh-based SiLU
        np.testing.assert_allclose(np.asarray(out[k]), np.asarray(ref[k]),
                                   rtol=2e-3, atol=2e-3)

    # TODO(synk): training_step (Adam update, grad clipping, losses/metrics) is
    # out of scope for this forward-pass kernel.
    print("KERNEL_OK")
</pallas_src>

<mosaic_0001>
module attributes {stable_mosaic.version = 11 : i64} {
  func.func @_fwd_kernel(%arg0: i32, %arg1: memref<8x105xf32, #tpu.memory_space<vmem>>, %arg2: memref<8x1xf32, #tpu.memory_space<vmem>>, %arg3: memref<105x144xf32, #tpu.memory_space<vmem>>, %arg4: memref<1x144xf32, #tpu.memory_space<vmem>>, %arg5: memref<144x16xf32, #tpu.memory_space<vmem>>, %arg6: memref<1x16xf32, #tpu.memory_space<vmem>>, %arg7: memref<16x16xf32, #tpu.memory_space<vmem>>, %arg8: memref<1x16xf32, #tpu.memory_space<vmem>>, %arg9: memref<1x16xf32, #tpu.memory_space<vmem>>, %arg10: memref<16x16xf32, #tpu.memory_space<vmem>>, %arg11: memref<1x16xf32, #tpu.memory_space<vmem>>, %arg12: memref<16x128xf32, #tpu.memory_space<vmem>>, %arg13: memref<1x128xf32, #tpu.memory_space<vmem>>, %arg14: memref<128x120xf32, #tpu.memory_space<vmem>>, %arg15: memref<16x120xf32, #tpu.memory_space<vmem>>, %arg16: memref<1x120xf32, #tpu.memory_space<vmem>>, %arg17: memref<120x128xf32, #tpu.memory_space<vmem>>, %arg18: memref<1x128xf32, #tpu.memory_space<vmem>>, %arg19: memref<8x128xf32, #tpu.memory_space<vmem>>, %arg20: memref<8x128xf32, #tpu.memory_space<vmem>>, %arg21: memref<8x128xf32, #tpu.memory_space<vmem>>) attributes {dimension_semantics = [#tpu.dimension_semantics<parallel>], iteration_bounds = array<i64: 1>, scalar_prefetch = 0 : i64, scratch_operands = 0 : i64, tpu.core_type = #tpu.core_type<tc>, window_params = [{transform_indices = @transform_0, window_bounds = array<i64: 8, 105>}, {transform_indices = @transform_1, window_bounds = array<i64: 8, 1>}, {pipeline_mode = #tpu.pipeline_mode<synchronous>, transform_indices = @transform_2, window_bounds = array<i64: 105, 144>}, {pipeline_mode = #tpu.pipeline_mode<synchronous>, transform_indices = @transform_3, window_bounds = array<i64: 1, 144>}, {pipeline_mode = #tpu.pipeline_mode<synchronous>, transform_indices = @transform_4, window_bounds = array<i64: 144, 16>}, {pipeline_mode = #tpu.pipeline_mode<synchronous>, transform_indices = @transform_5, window_bounds = array<i64: 1, 16>}, {pipeline_mode = #tpu.pipeline_mode<synchronous>, transform_indices = @transform_6, window_bounds = array<i64: 16, 16>}, {pipeline_mode = #tpu.pipeline_mode<synchronous>, transform_indices = @transform_7, window_bounds = array<i64: 1, 16>}, {pipeline_mode = #tpu.pipeline_mode<synchronous>, transform_indices = @transform_8, window_bounds = array<i64: 1, 16>}, {pipeline_mode = #tpu.pipeline_mode<synchronous>, transform_indices = @transform_9, window_bounds = array<i64: 16, 16>}, {pipeline_mode = #tpu.pipeline_mode<synchronous>, transform_indices = @transform_10, window_bounds = array<i64: 1, 16>}, {pipeline_mode = #tpu.pipeline_mode<synchronous>, transform_indices = @transform_11, window_bounds = array<i64: 16, 128>}, {pipeline_mode = #tpu.pipeline_mode<synchronous>, transform_indices = @transform_12, window_bounds = array<i64: 1, 128>}, {pipeline_mode = #tpu.pipeline_mode<synchronous>, transform_indices = @transform_13, window_bounds = array<i64: 128, 120>}, {pipeline_mode = #tpu.pipeline_mode<synchronous>, transform_indices = @transform_14, window_bounds = array<i64: 16, 120>}, {pipeline_mode = #tpu.pipeline_mode<synchronous>, transform_indices = @transform_15, window_bounds = array<i64: 1, 120>}, {pipeline_mode = #tpu.pipeline_mode<synchronous>, transform_indices = @transform_16, window_bounds = array<i64: 120, 128>}, {pipeline_mode = #tpu.pipeline_mode<synchronous>, transform_indices = @transform_17, window_bounds = array<i64: 1, 128>}, {transform_indices = @transform_18, window_bounds = array<i64: 8, 128>}, {transform_indices = @transform_19, window_bounds = array<i64: 8, 128>}, {transform_indices = @transform_20, window_bounds = array<i64: 8, 128>}]} {
    %c0 = arith.constant 0 : index
    %c0_0 = arith.constant 0 : index
    %0 = vector.load %arg1[%c0, %c0_0] : memref<8x105xf32, #tpu.memory_space<vmem>>, vector<8x105xf32>
    %c0_1 = arith.constant 0 : index
    %c0_2 = arith.constant 0 : index
    %1 = vector.load %arg3[%c0_1, %c0_2] : memref<105x144xf32, #tpu.memory_space<vmem>>, vector<105x144xf32>
    %cst = arith.constant dense<0.000000e+00> : vector<8x144xf32>
    %2 = tpu.matmul %0, %1, %cst {dimension_numbers = #tpu.dot_dimension_numbers<[1], [0], [0], [1], [0, 0, 1, 1], [], []>} : vector<8x105xf32>, vector<105x144xf32>, vector<8x144xf32> -> vector<8x144xf32>
    %c0_3 = arith.constant 0 : index
    %c0_4 = arith.constant 0 : index
    %3 = vector.load %arg4[%c0_3, %c0_4] : memref<1x144xf32, #tpu.memory_space<vmem>>, vector<1x144xf32>
    %4 = vector.broadcast %3 : vector<1x144xf32> to vector<8x144xf32>
    %5 = arith.addf %2, %4 : vector<8x144xf32>
    %cst_5 = arith.constant 5.000000e-01 : f32
    %6 = vector.broadcast %cst_5 : f32 to vector<8x144xf32>
    %7 = arith.mulf %6, %5 : vector<8x144xf32>
    %cst_6 = arith.constant 5.000000e-01 : f32
    %8 = vector.broadcast %cst_6 : f32 to vector<8x144xf32>
    %9 = arith.mulf %8, %5 : vector<8x144xf32>
    %10 = math.tanh %9 : vector<8x144xf32>
    %cst_7 = arith.constant 1.000000e+00 : f32
    %11 = vector.broadcast %cst_7 : f32 to vector<8x144xf32>
    %12 = arith.addf %10, %11 : vector<8x144xf32>
    %13 = arith.mulf %7, %12 : vector<8x144xf32>
    %c0_8 = arith.constant 0 : index
    %c0_9 = arith.constant 0 : index
    %14 = vector.load %arg5[%c0_8, %c0_9] : memref<144x16xf32, #tpu.memory_space<vmem>>, vector<144x16xf32>
    %cst_10 = arith.constant dense<0.000000e+00> : vector<8x16xf32>
    %15 = tpu.matmul %13, %14, %cst_10 {dimension_numbers = #tpu.dot_dimension_numbers<[1], [0], [0], [1], [0, 0, 1, 1], [], []>} : vector<8x144xf32>, vector<144x16xf32>, vector<8x16xf32> -> vector<8x16xf32>
    %c0_11 = arith.constant 0 : index
    %c0_12 = arith.constant 0 : index
    %16 = vector.load %arg6[%c0_11, %c0_12] : memref<1x16xf32, #tpu.memory_space<vmem>>, vector<1x16xf32>
    %17 = vector.broadcast %16 : vector<1x16xf32> to vector<8x16xf32>
    %18 = arith.addf %15, %17 : vector<8x16xf32>
    %cst_13 = arith.constant 5.000000e-01 : f32
    %19 = vector.broadcast %cst_13 : f32 to vector<8x16xf32>
    %20 = arith.mulf %19, %18 : vector<8x16xf32>
    %cst_14 = arith.constant 5.000000e-01 : f32
    %21 = vector.broadcast %cst_14 : f32 to vector<8x16xf32>
    %22 = arith.mulf %21, %18 : vector<8x16xf32>
    %23 = math.tanh %22 : vector<8x16xf32>
    %cst_15 = arith.constant 1.000000e+00 : f32
    %24 = vector.broadcast %cst_15 : f32 to vector<8x16xf32>
    %25 = arith.addf %23, %24 : vector<8x16xf32>
    %26 = arith.mulf %20, %25 : vector<8x16xf32>
    %c0_16 = arith.constant 0 : index
    %c0_17 = arith.constant 0 : index
    %27 = vector.load %arg2[%c0_16, %c0_17] : memref<8x1xf32, #tpu.memory_space<vmem>>, vector<8x1xf32>
    %c0_18 = arith.constant 0 : index
    %c0_19 = arith.constant 0 : index
    %28 = vector.load %arg7[%c0_18, %c0_19] : memref<16x16xf32, #tpu.memory_space<vmem>>, vector<16x16xf32>
    %cst_20 = arith.constant dense<0.000000e+00> : vector<8x16xf32>
    %29 = tpu.matmul %26, %28, %cst_20 {dimension_numbers = #tpu.dot_dimension_numbers<[1], [0], [0], [1], [0, 0, 1, 1], [], []>} : vector<8x16xf32>, vector<16x16xf32>, vector<8x16xf32> -> vector<8x16xf32>
    %c0_21 = arith.constant 0 : index
    %c0_22 = arith.constant 0 : index
    %30 = vector.load %arg8[%c0_21, %c0_22] : memref<1x16xf32, #tpu.memory_space<vmem>>, vector<1x16xf32>
    %31 = vector.broadcast %27 : vector<8x1xf32> to vector<8x16xf32>
    %32 = vector.broadcast %30 : vector<1x16xf32> to vector<8x16xf32>
    %33 = arith.mulf %31, %32 : vector<8x16xf32>
    %34 = arith.addf %29, %33 : vector<8x16xf32>
    %c0_23 = arith.constant 0 : index
    %c0_24 = arith.constant 0 : index
    %35 = vector.load %arg9[%c0_23, %c0_24] : memref<1x16xf32, #tpu.memory_space<vmem>>, vector<1x16xf32>
    %36 = vector.broadcast %35 : vector<1x16xf32> to vector<8x16xf32>
    %37 = arith.addf %34, %36 : vector<8x16xf32>
    %cst_25 = arith.constant 5.000000e-01 : f32
    %38 = vector.broadcast %cst_25 : f32 to vector<8x16xf32>
    %39 = arith.mulf %38, %37 : vector<8x16xf32>
    %cst_26 = arith.constant 5.000000e-01 : f32
    %40 = vector.broadcast %cst_26 : f32 to vector<8x16xf32>
    %41 = arith.mulf %40, %37 : vector<8x16xf32>
    %42 = math.tanh %41 : vector<8x16xf32>
    %cst_27 = arith.constant 1.000000e+00 : f32
    %43 = vector.broadcast %cst_27 : f32 to vector<8x16xf32>
    %44 = arith.addf %42, %43 : vector<8x16xf32>
    %45 = arith.mulf %39, %44 : vector<8x16xf32>
    %c0_28 = arith.constant 0 : index
    %c0_29 = arith.constant 0 : index
    %46 = vector.load %arg10[%c0_28, %c0_29] : memref<16x16xf32, #tpu.memory_space<vmem>>, vector<16x16xf32>
    %cst_30 = arith.constant dense<0.000000e+00> : vector<8x16xf32>
    %47 = tpu.matmul %45, %46, %cst_30 {dimension_numbers = #tpu.dot_dimension_numbers<[1], [0], [0], [1], [0, 0, 1, 1], [], []>} : vector<8x16xf32>, vector<16x16xf32>, vector<8x16xf32> -> vector<8x16xf32>
    %c0_31 = arith.constant 0 : index
    %c0_32 = arith.constant 0 : index
    %48 = vector.load %arg11[%c0_31, %c0_32] : memref<1x16xf32, #tpu.memory_space<vmem>>, vector<1x16xf32>
    %49 = vector.broadcast %48 : vector<1x16xf32> to vector<8x16xf32>
    %50 = arith.addf %47, %49 : vector<8x16xf32>
    %cst_33 = arith.constant 5.000000e-01 : f32
    %51 = vector.broadcast %cst_33 : f32 to vector<8x16xf32>
    %52 = arith.mulf %51, %50 : vector<8x16xf32>
    %cst_34 = arith.constant 5.000000e-01 : f32
    %53 = vector.broadcast %cst_34 : f32 to vector<8x16xf32>
    %54 = arith.mulf %53, %50 : vector<8x16xf32>
    %55 = math.tanh %54 : vector<8x16xf32>
    %cst_35 = arith.constant 1.000000e+00 : f32
    %56 = vector.broadcast %cst_35 : f32 to vector<8x16xf32>
    %57 = arith.addf %55, %56 : vector<8x16xf32>
    %58 = arith.mulf %52, %57 : vector<8x16xf32>
    %c0_36 = arith.constant 0 : index
    %c0_37 = arith.constant 0 : index
    %59 = vector.load %arg12[%c0_36, %c0_37] : memref<16x128xf32, #tpu.memory_space<vmem>>, vector<16x128xf32>
    %cst_38 = arith.constant dense<0.000000e+00> : vector<8x128xf32>
    %60 = tpu.matmul %58, %59, %cst_38 {dimension_numbers = #tpu.dot_dimension_numbers<[1], [0], [0], [1], [0, 0, 1, 1], [], []>} : vector<8x16xf32>, vector<16x128xf32>, vector<8x128xf32> -> vector<8x128xf32>
    %c0_39 = arith.constant 0 : index
    %c0_40 = arith.constant 0 : index
    %61 = vector.load %arg13[%c0_39, %c0_40] : memref<1x128xf32, #tpu.memory_space<vmem>>, vector<1x128xf32>
    %62 = vector.broadcast %61 : vector<1x128xf32> to vector<8x128xf32>
    %63 = arith.addf %60, %62 : vector<8x128xf32>
    %cst_41 = arith.constant 5.000000e-01 : f32
    %64 = vector.broadcast %cst_41 : f32 to vector<8x128xf32>
    %65 = arith.mulf %64, %63 : vector<8x128xf32>
    %cst_42 = arith.constant 5.000000e-01 : f32
    %66 = vector.broadcast %cst_42 : f32 to vector<8x128xf32>
    %67 = arith.mulf %66, %63 : vector<8x128xf32>
    %68 = math.tanh %67 : vector<8x128xf32>
    %cst_43 = arith.constant 1.000000e+00 : f32
    %69 = vector.broadcast %cst_43 : f32 to vector<8x128xf32>
    %70 = arith.addf %68, %69 : vector<8x128xf32>
    %71 = arith.mulf %65, %70 : vector<8x128xf32>
    %c0_44 = arith.constant 0 : index
    %c0_45 = arith.constant 0 : index
    %72 = vector.load %arg19[%c0_44, %c0_45] : memref<8x128xf32, #tpu.memory_space<vmem>>, vector<8x128xf32>
    tpu.vector_store %arg19[%c0_44, %c0_45], %71 {strides = array<i32>} : memref<8x128xf32, #tpu.memory_space<vmem>>, vector<8x128xf32>,
    %c0_46 = arith.constant 0 : index
    %c0_47 = arith.constant 0 : index
    %73 = vector.load %arg15[%c0_46, %c0_47] : memref<16x120xf32, #tpu.memory_space<vmem>>, vector<16x120xf32>
    %cst_48 = arith.constant dense<0.000000e+00> : vector<8x120xf32>
    %74 = tpu.matmul %26, %73, %cst_48 {dimension_numbers = #tpu.dot_dimension_numbers<[1], [0], [0], [1], [0, 0, 1, 1], [], []>} : vector<8x16xf32>, vector<16x120xf32>, vector<8x120xf32> -> vector<8x120xf32>
    %c0_49 = arith.constant 0 : index
    %c0_50 = arith.constant 0 : index
    %75 = vector.load %arg16[%c0_49, %c0_50] : memref<1x120xf32, #tpu.memory_space<vmem>>, vector<1x120xf32>
    %76 = vector.broadcast %75 : vector<1x120xf32> to vector<8x120xf32>
    %77 = arith.addf %74, %76 : vector<8x120xf32>
    %c0_51 = arith.constant 0 : index
    %c0_52 = arith.constant 0 : index
    %78 = vector.load %arg14[%c0_51, %c0_52] : memref<128x120xf32, #tpu.memory_space<vmem>>, vector<128x120xf32>
    %cst_53 = arith.constant dense<0.000000e+00> : vector<8x120xf32>
    %79 = tpu.matmul %71, %78, %cst_53 {dimension_numbers = #tpu.dot_dimension_numbers<[1], [0], [0], [1], [0, 0, 1, 1], [], []>} : vector<8x128xf32>, vector<128x120xf32>, vector<8x120xf32> -> vector<8x120xf32>
    %80 = arith.addf %77, %79 : vector<8x120xf32>
    %cst_54 = arith.constant 5.000000e-01 : f32
    %81 = vector.broadcast %cst_54 : f32 to vector<8x120xf32>
    %82 = arith.mulf %81, %80 : vector<8x120xf32>
    %cst_55 = arith.constant 5.000000e-01 : f32
    %83 = vector.broadcast %cst_55 : f32 to vector<8x120xf32>
    %84 = arith.mulf %83, %80 : vector<8x120xf32>
    %85 = math.tanh %84 : vector<8x120xf32>
    %cst_56 = arith.constant 1.000000e+00 : f32
    %86 = vector.broadcast %cst_56 : f32 to vector<8x120xf32>
    %87 = arith.addf %85, %86 : vector<8x120xf32>
    %88 = arith.mulf %82, %87 : vector<8x120xf32>
    %cst_57 = arith.constant 5.000000e-01 : f32
    %89 = vector.broadcast %cst_57 : f32 to vector<8x120xf32>
    %90 = arith.mulf %89, %77 : vector<8x120xf32>
    %cst_58 = arith.constant 5.000000e-01 : f32
    %91 = vector.broadcast %cst_58 : f32 to vector<8x120xf32>
    %92 = arith.mulf %91, %77 : vector<8x120xf32>
    %93 = math.tanh %92 : vector<8x120xf32>
    %cst_59 = arith.constant 1.000000e+00 : f32
    %94 = vector.broadcast %cst_59 : f32 to vector<8x120xf32>
    %95 = arith.addf %93, %94 : vector<8x120xf32>
    %96 = arith.mulf %90, %95 : vector<8x120xf32>
    %97 = tpu.concatenate %88, %96 in 0 : vector<8x120xf32>, vector<8x120xf32> -> vector<16x120xf32>
    %c0_60 = arith.constant 0 : index
    %c0_61 = arith.constant 0 : index
    %98 = vector.load %arg17[%c0_60, %c0_61] : memref<120x128xf32, #tpu.memory_space<vmem>>, vector<120x128xf32>
    %cst_62 = arith.constant dense<0.000000e+00> : vector<16x128xf32>
    %99 = tpu.matmul %97, %98, %cst_62 {dimension_numbers = #tpu.dot_dimension_numbers<[1], [0], [0], [1], [0, 0, 1, 1], [], []>} : vector<16x120xf32>, vector<120x128xf32>, vector<16x128xf32> -> vector<16x128xf32>
    %c0_63 = arith.constant 0 : index
    %c0_64 = arith.constant 0 : index
    %100 = vector.load %arg18[%c0_63, %c0_64] : memref<1x128xf32, #tpu.memory_space<vmem>>, vector<1x128xf32>
    %101 = vector.broadcast %100 : vector<1x128xf32> to vector<16x128xf32>
    %102 = arith.addf %99, %101 : vector<16x128xf32>
    %103 = vector.extract_strided_slice %102 {offsets = [0, 0], sizes = [8, 128], strides = [1, 1]} : vector<16x128xf32> to vector<8x128xf32>
    %c0_65 = arith.constant 0 : index
    %c0_66 = arith.constant 0 : index
    %104 = vector.load %arg20[%c0_65, %c0_66] : memref<8x128xf32, #tpu.memory_space<vmem>>, vector<8x128xf32>
    tpu.vector_store %arg20[%c0_65, %c0_66], %103 {strides = array<i32>} : memref<8x128xf32, #tpu.memory_space<vmem>>, vector<8x128xf32>,
    %105 = vector.extract_strided_slice %102 {offsets = [8, 0], sizes = [8, 128], strides = [1, 1]} : vector<16x128xf32> to vector<8x128xf32>
    %c0_67 = arith.constant 0 : index
    %c0_68 = arith.constant 0 : index
    %106 = vector.load %arg21[%c0_67, %c0_68] : memref<8x128xf32, #tpu.memory_space<vmem>>, vector<8x128xf32>
    tpu.vector_store %arg21[%c0_67, %c0_68], %105 {strides = array<i32>} : memref<8x128xf32, #tpu.memory_space<vmem>>, vector<8x128xf32>,
    return
  }
  func.func @transform_0(%arg0: i32) -> (i32, i32) {
    %c0_i32 = arith.constant 0 : i32
    %c0_i32_0 = arith.constant 0 : i32
    return %arg0, %c0_i32 : i32, i32
  }
  func.func @transform_1(%arg0: i32) -> (i32, i32) {
    %c0_i32 = arith.constant 0 : i32
    %c0_i32_0 = arith.constant 0 : i32
    return %arg0, %c0_i32 : i32, i32
  }
  func.func @transform_2(%arg0: i32) -> (i32, i32) {
    %c0_i32 = arith.constant 0 : i32
    %c0_i32_0 = arith.constant 0 : i32
    %c0_i32_1 = arith.constant 0 : i32
    return %c0_i32, %c0_i32_0 : i32, i32
  }
  func.func @transform_3(%arg0: i32) -> (i32, i32) {
    %c0_i32 = arith.constant 0 : i32
    %c0_i32_0 = arith.constant 0 : i32
    %c0_i32_1 = arith.constant 0 : i32
    return %c0_i32, %c0_i32_0 : i32, i32
  }
  func.func @transform_4(%arg0: i32) -> (i32, i32) {
    %c0_i32 = arith.constant 0 : i32
    %c0_i32_0 = arith.constant 0 : i32
    %c0_i32_1 = arith.constant 0 : i32
    return %c0_i32, %c0_i32_0 : i32, i32
  }
  func.func @transform_5(%arg0: i32) -> (i32, i32) {
    %c0_i32 = arith.constant 0 : i32
    %c0_i32_0 = arith.constant 0 : i32
    %c0_i32_1 = arith.constant 0 : i32
    return %c0_i32, %c0_i32_0 : i32, i32
  }
  func.func @transform_6(%arg0: i32) -> (i32, i32) {
    %c0_i32 = arith.constant 0 : i32
    %c0_i32_0 = arith.constant 0 : i32
    %c0_i32_1 = arith.constant 0 : i32
    return %c0_i32, %c0_i32_0 : i32, i32
  }
  func.func @transform_7(%arg0: i32) -> (i32, i32) {
    %c0_i32 = arith.constant 0 : i32
    %c0_i32_0 = arith.constant 0 : i32
    %c0_i32_1 = arith.constant 0 : i32
    return %c0_i32, %c0_i32_0 : i32, i32
  }
  func.func @transform_8(%arg0: i32) -> (i32, i32) {
    %c0_i32 = arith.constant 0 : i32
    %c0_i32_0 = arith.constant 0 : i32
    %c0_i32_1 = arith.constant 0 : i32
    return %c0_i32, %c0_i32_0 : i32, i32
  }
  func.func @transform_9(%arg0: i32) -> (i32, i32) {
    %c0_i32 = arith.constant 0 : i32
    %c0_i32_0 = arith.constant 0 : i32
    %c0_i32_1 = arith.constant 0 : i32
    return %c0_i32, %c0_i32_0 : i32, i32
  }
  func.func @transform_10(%arg0: i32) -> (i32, i32) {
    %c0_i32 = arith.constant 0 : i32
    %c0_i32_0 = arith.constant 0 : i32
    %c0_i32_1 = arith.constant 0 : i32
    return %c0_i32, %c0_i32_0 : i32, i32
  }
  func.func @transform_11(%arg0: i32) -> (i32, i32) {
    %c0_i32 = arith.constant 0 : i32
    %c0_i32_0 = arith.constant 0 : i32
    %c0_i32_1 = arith.constant 0 : i32
    return %c0_i32, %c0_i32_0 : i32, i32
  }
  func.func @transform_12(%arg0: i32) -> (i32, i32) {
    %c0_i32 = arith.constant 0 : i32
    %c0_i32_0 = arith.constant 0 : i32
    %c0_i32_1 = arith.constant 0 : i32
    return %c0_i32, %c0_i32_0 : i32, i32
  }
  func.func @transform_13(%arg0: i32) -> (i32, i32) {
    %c0_i32 = arith.constant 0 : i32
    %c0_i32_0 = arith.constant 0 : i32
    %c0_i32_1 = arith.constant 0 : i32
    return %c0_i32, %c0_i32_0 : i32, i32
  }
  func.func @transform_14(%arg0: i32) -> (i32, i32) {
    %c0_i32 = arith.constant 0 : i32
    %c0_i32_0 = arith.constant 0 : i32
    %c0_i32_1 = arith.constant 0 : i32
    return %c0_i32, %c0_i32_0 : i32, i32
  }
  func.func @transform_15(%arg0: i32) -> (i32, i32) {
    %c0_i32 = arith.constant 0 : i32
    %c0_i32_0 = arith.constant 0 : i32
    %c0_i32_1 = arith.constant 0 : i32
    return %c0_i32, %c0_i32_0 : i32, i32
  }
  func.func @transform_16(%arg0: i32) -> (i32, i32) {
    %c0_i32 = arith.constant 0 : i32
    %c0_i32_0 = arith.constant 0 : i32
    %c0_i32_1 = arith.constant 0 : i32
    return %c0_i32, %c0_i32_0 : i32, i32
  }
  func.func @transform_17(%arg0: i32) -> (i32, i32) {
    %c0_i32 = arith.constant 0 : i32
    %c0_i32_0 = arith.constant 0 : i32
    %c0_i32_1 = arith.constant 0 : i32
    return %c0_i32, %c0_i32_0 : i32, i32
  }
  func.func @transform_18(%arg0: i32) -> (i32, i32) {
    %c0_i32 = arith.constant 0 : i32
    %c0_i32_0 = arith.constant 0 : i32
    return %arg0, %c0_i32 : i32, i32
  }
  func.func @transform_19(%arg0: i32) -> (i32, i32) {
    %c0_i32 = arith.constant 0 : i32
    %c0_i32_0 = arith.constant 0 : i32
    return %arg0, %c0_i32 : i32, i32
  }
  func.func @transform_20(%arg0: i32) -> (i32, i32) {
    %c0_i32 = arith.constant 0 : i32
    %c0_i32_0 = arith.constant 0 : i32
    return %arg0, %c0_i32 : i32, i32
  }
}

</mosaic_0001>

<bundles_post_ra>
// kernel: tpu_custom_call.1
= control target key start
LH: loop header
LB: loop body
LE: loop exit
PB: predicated region body
PF: predicated region fallthrough
CT: control target
= control target key end

     0   :  { %s1742_s0 = inlined_call_operand.vmem [shape: f32[8,105], index: 0, kind: input, shape index: {}]   ;;  %s1743_s1 = inlined_call_operand.vmem [shape: f32[8,1], index: 1, kind: input, shape index: {}]   ;;  %s1744_s2 = inlined_call_operand.vmem [shape: f32[105,144], index: 2, kind: input, shape index: {}]   ;;  %s1745_s3 = inlined_call_operand.vmem [shape: f32[1,144], index: 3, kind: input, shape index: {}]   ;;  %s1746_s4 = inlined_call_operand.vmem [shape: f32[144,16], index: 4, kind: input, shape index: {}]   ;;  %s1747_s5 = inlined_call_operand.vmem [shape: f32[1,16], index: 5, kind: input, shape index: {}]   ;;  %s1748_s6 = inlined_call_operand.vmem [shape: f32[16,16], index: 6, kind: input, shape index: {}]   ;;  %s1749_s7 = inlined_call_operand.vmem [shape: f32[1,16], index: 7, kind: input, shape index: {}]   ;;  %s1750_s8 = inlined_call_operand.vmem [shape: f32[1,16], index: 8, kind: input, shape index: {}]   ;;  %s1751_s9 = inlined_call_operand.vmem [shape: f32[16,16], index: 9, kind: input, shape index: {}]   ;;  %s1752_s10 = inlined_call_operand.vmem [shape: f32[1,16], index: 10, kind: input, shape index: {}]   ;;  %s1753_s11 = inlined_call_operand.vmem [shape: f32[16,128], index: 11, kind: input, shape index: {}]   ;;  %s1754_s12 = inlined_call_operand.vmem [shape: f32[1,128], index: 12, kind: input, shape index: {}]   ;;  %s1755_s13 = inlined_call_operand.vmem [shape: f32[128,120], index: 13, kind: input, shape index: {}]   ;;  %s1756_s14 = inlined_call_operand.vmem [shape: f32[16,120], index: 14, kind: input, shape index: {}]   ;;  %s1757_s15 = inlined_call_operand.vmem [shape: f32[1,120], index: 15, kind: input, shape index: {}]   ;;  %s1758_s16 = inlined_call_operand.vmem [shape: f32[120,128], index: 16, kind: input, shape index: {}]   ;;  %s1759_s17 = inlined_call_operand.vmem [shape: f32[1,128], index: 17, kind: input, shape index: {}]   ;;  %s1760_s18 = inlined_call_operand.hbm [shape: f32[8,128], index: 18, kind: output, shape index: {0}]   ;;  %s1761_s19 = inlined_call_operand.hbm [shape: f32[8,128], index: 19, kind: output, shape index: {1}]   ;;  %s1762_s20 = inlined_call_operand.hbm [shape: f32[8,128], index: 20, kind: output, shape index: {2}]  }
   0x1   :  { %1765 = sst [smem:[#allocation9_spill]] %s1742_s0 }
   0x2   :  { %1766 = sst [smem:[#allocation10_spill]] %s1743_s1 }
   0x3   :  { %1767 = sst [smem:[#allocation11_spill]] %s1744_s2 }
   0x4   :  { %1768 = sst [smem:[#allocation12_spill]] %s1745_s3 }
   0x5   :  { %1769 = sst [smem:[#allocation13_spill]] %s1746_s4 }
   0x6   :  { %26 = vsyncpa [#allocation3], 0  ;;  %s1770_s23 = sld [smem:[#allocation11_spill]]  ;;  %v1268_v7 = vmov 0.0   ;;  %v1269_v13 = vmov 0.0|0.0   ;;  %s1771_s29 = sld [smem:[#allocation13_spill]] }
   0x7   :  { %180 = vmatprep.mubr.f32.mxu0 %v1268_v7  ;;  %1082 = vmatprep.subr.bf16.mxu1 %v1269_v13 }
   0xc   :  { %v66_v0 = vld [vmem:[%s1770_s23 + $0x8] sm:$0xff]  ;;  %v68_v1 = vld [vmem:[%s1770_s23 + $0x18] sm:$0xff]  ;;  %v65_v2 = vld [vmem:[%s1770_s23] sm:$0xff] }
   0xd   :  { %v1052_v3 = vpack.c.bf16 %v68_v1, %v66_v0  ;;  %v67_v4 = vld [vmem:[%s1770_s23 + $0x10] sm:$0xff]  ;;  %v70_v5 = vld [vmem:[%s1770_s23 + $0x28] sm:$0xff]  ;;  %v72_v6 = vld [vmem:[%s1770_s23 + $0x38] sm:$0xff] }
   0xe   :  { %v1054_v8 = vpack.c.bf16 %v67_v4, %v65_v2  ;;  %v1056_v9 = vpack.c.bf16 %v72_v6, %v70_v5  ;;  %v69_v10 = vld [vmem:[%s1770_s23 + $0x20] sm:$0xff]  ;;  %v71_v11 = vld [vmem:[%s1770_s23 + $0x30] sm:$0xff]  ;;  %v74_v12 = vld [vmem:[%s1770_s23 + $0x48] sm:$0xff] }
   0xf   :  { %1053 = vmatprep.subr.bf16.mxu0 %v1052_v3  ;;  %v76_v14 = vld [vmem:[%s1770_s23 + $0x58] sm:$0xff]  ;;  %v1058_v15 = vpack.c.bf16 %v71_v11, %v69_v10  ;;  %v73_v17 = vld [vmem:[%s1770_s23 + $0x40] sm:$0xff]  ;;  %v75_v18 = vld [vmem:[%s1770_s23 + $0x50] sm:$0xff] }
  0x10   :  { %1055 = vmatpush1.bf16.msra.mxu0 %v1054_v8  ;;  %v1060_v16 = vpack.c.bf16 %v76_v14, %v74_v12  ;;  %v78_v19 = vld [vmem:[%s1770_s23 + $0x68] sm:$0xff]  ;;  %v80_v20 = vld [vmem:[%s1770_s23 + $0x78] sm:$0xff]  ;;  %v1062_v21 = vpack.c.bf16 %v75_v18, %v73_v17  ;;  %v77_v22 = vld [vmem:[%s1770_s23 + $0x60] sm:$0xff] }
  0x11   :  { %1057 = vmatprep.subr.bf16.mxu0 %v1056_v9  ;;  %v1064_v23 = vpack.c.bf16 %v80_v20, %v78_v19  ;;  %v79_v24 = vld [vmem:[%s1770_s23 + $0x70] sm:$0xff]  ;;  %v82_v25 = vld [vmem:[%s1770_s23 + $0x88] sm:$0xff]  ;;  %v84_v26 = vld [vmem:[%s1770_s23 + $0x98] sm:$0xff] }
  0x12   :  { %v195_v27 = vld [vmem:[%s1771_s29] sm:$0xff]  ;;  %v196_v28 = vld [vmem:[%s1771_s29 + $0x8] sm:$0xff]  ;;  %v197_v29 = vld [vmem:[%s1771_s29 + $0x10] sm:$0xff]  ;;  %v1066_v32 = vpack.c.bf16 %v79_v24, %v77_v22  ;;  %v1068_v34 = vpack.c.bf16 %v84_v26, %v82_v25 }
  0x13   :  { %v1083_v30 = vpack.c.bf16 %v196_v28, %v195_v27  ;;  %v198_v31 = vld [vmem:[%s1771_s29 + $0x18] sm:$0xff]  ;;  %v81_v33 = vld [vmem:[%s1770_s23 + $0x80] sm:$0xff]  ;;  %v83_v35 = vld [vmem:[%s1770_s23 + $0x90] sm:$0xff] }
  0x14   :  { %1059 = vmatpush1.bf16.msra.mxu0 %v1058_v15  ;;  %v86_v36 = vld [vmem:[%s1770_s23 + $0xa8] sm:$0xff]  ;;  %v1086_v37 = vpack.c.bf16 %v198_v31, %v197_v29 }
  0x15   :  { %1061 = vmatprep.subr.bf16.mxu0 %v1060_v16  ;;  %1084 = vmatpush1.bf16.msra.mxu1 %v1083_v30 }
  0x18   :  { %1063 = vmatpush1.bf16.msra.mxu0 %v1062_v21 }
  0x19   :  { %1065 = vmatprep.subr.bf16.mxu0 %v1064_v23 }
  0x1a   :  { %27 = vsyncpa [#allocation5], 0  ;;  %v88_v38 = vld [vmem:[%s1770_s23 + $0xb8] sm:$0xff]  ;;  %1085 = vmatprep.subr.bf16.mxu1 %v1269_v13  ;;  %v199_v39 = vld [vmem:[%s1771_s29 + $0x20] sm:$0xff]  ;;  %v1070_v41 = vpack.c.bf16 %v83_v35, %v81_v33  ;;  %vm109_vm0 = vcmask 1040384   ;;  %vm1270_vm1 = vmmov 1   ;;  %v95_v9 = vlaneseq }
  0x1b   :  { %v200_v40 = vld [vmem:[%s1771_s29 + $0x28] sm:$0xff]  ;;  %v1072_v42 = vpack.c.bf16 %v88_v38, %v86_v36  ;;  %v85_v43 = vld [vmem:[%s1770_s23 + $0xa0] sm:$0xff]  ;;  %v87_v44 = vld [vmem:[%s1770_s23 + $0xb0] sm:$0xff]  ;;  %1087 = vmatpush1.bf16.msra.mxu1 %v1086_v37  ;;  %s1772_s27 = sld [smem:[#allocation9_spill]]  ;;  %vm105_vm3 = vcmask 859136   ;;  %s1773_s24 = sld [smem:[#allocation12_spill]] }
  0x1c   :  { %1067 = vmatpush1.bf16.msra.mxu0 %v1066_v32  ;;  %v90_v45 = vld [vmem:[%s1770_s23 + $0xc8] sm:$0xff]  ;;  %v1089_v46 = vpack.c.bf16 %v200_v40, %v199_v39  ;;  %v92_v47 = vld [vmem:[%s1770_s23 + $0xd8] sm:$0x1]  ;;  %1088 = vmatprep.subr.bf16.mxu1 %v1269_v13  ;;  %v201_v48 = vld [vmem:[%s1771_s29 + $0x30] sm:$0xff]  ;;  %v1074_v50 = vpack.c.bf16 %v87_v44, %v85_v43  ;;  %v96_v10 = vshrl.u32 %v95_v9, 7  ;;  %vm220_vm4 = vcmask 130048  }
  0x1d   :  { %1069 = vmatprep.subr.bf16.mxu0 %v1068_v34  ;;  %v202_v49 = vld [vmem:[%s1771_s29 + $0x38] sm:$0xff]  ;;  %v1076_v51 = vpack.c.bf16 %v92_v47, %v90_v45  ;;  %v89_v52 = vld [vmem:[%s1770_s23 + $0xc0] sm:$0xff]  ;;  %v91_v53 = vld [vmem:[%s1770_s23 + $0xd0] sm:$0x1]  ;;  %vm1271_vm5 = vmmov 0   ;;  %s1774_s30 = sld [smem:[#allocation10_spill]] }
  0x1e   :  { %v1092_v54 = vpack.c.bf16 %v202_v49, %v201_v48  ;;  %vm1077_vm2 = vmpackc.low %vm109_vm0, %vm1270_vm1  ;;  %v1079_v55 = vpack.c.bf16 %v91_v53, %v89_v52  ;;  %v203_v57 = vld [vmem:[%s1771_s29 + $0x40] sm:$0xff]  ;;  %v204_v58 = vld [vmem:[%s1771_s29 + $0x48] sm:$0xff]  ;;  %v97_v11 = vsub.s32 0, %v96_v10  ;;  %v101_v14 = vsub.s32 1, %v96_v10 }
  0x1f   :  { %1090 = vmatpush1.bf16.msra.mxu1 %v1089_v46  ;;  %v1095_v59 = vpack.c.bf16 %v204_v58, %v203_v57  ;;  %v205_v60 = vld [vmem:[%s1771_s29 + $0x50] sm:$0xff]  ;;  %v206_v61 = vld [vmem:[%s1771_s29 + $0x58] sm:$0xff]  ;;  %v207_v63 = vld [vmem:[%s1771_s29 + $0x60] sm:$0xff]  ;;  %v1272_v36 = vmov 0   ;;  %vm768_vm6 = vcmask 982016  }
  0x20   :  { %1071 = vmatpush1.bf16.msra.mxu0 %v1070_v41  ;;  %1091 = vmatprep.subr.bf16.mxu1 %v1269_v13  ;;  %v1098_v62 = vpack.c.bf16 %v206_v61, %v205_v60  ;;  %v208_v0 = vld [vmem:[%s1771_s29 + $0x68] sm:$0xff]  ;;  %v209_v2 = vld [vmem:[%s1771_s29 + $0x70] sm:$0xff]  ;;  %v210_v3 = vld [vmem:[%s1771_s29 + $0x78] sm:$0xff] }
  0x21   :  { %1073 = vmatprep.subr.bf16.mxu0 %v1072_v42  ;;  %v64_v56 = vld [vmem:[%s1772_s27] sm:$0xff]  ;;  %v1101_v1 = vpack.c.bf16 %v208_v0, %v207_v63  ;;  %v1104_v4 = vpack.c.bf16 %v210_v3, %v209_v2  ;;  %v212_v6 = vld [vmem:[%s1771_s29 + $0x88] sm:$0xff]  ;;  %1181 = vset.pattern.permute.xlu0 %v1272_v36 }
  0x22   :  { %v211_v5 = vld [vmem:[%s1771_s29 + $0x80] sm:$0xff]  ;;  %v300_v30 = vld [vmem:[%s1748_s6 + $0x8] sm:$0xff] }
  0x23   :  { %1093 = vmatpush1.bf16.msra.mxu1 %v1092_v54  ;;  %v1107_v8 = vpack.c.bf16 %v212_v6, %v211_v5  ;;  %v93_v12 = vld [vmem:[%s1773_s24] sm:$0x3]  ;;  %v573_v33 = vld [vmem:[%s1756_s14 + $0x8] sm:$0xff] }
  0x24   :  { %1075 = vmatpush1.bf16.msra.mxu0 %v1074_v50  ;;  %1094 = vmatprep.subr.bf16.mxu1 %v1269_v13  ;;  %v98_v15 = vrot.slane %v93_v12, %v97_v11  ;;  %v102_v16 = vrot.slane %v93_v12, %v101_v14  ;;  %v299_v29 = vld [vmem:[%s1748_s6] sm:$0xff]  ;;  %v400_v46 = vld [vmem:[%s1751_s9 + $0x8] sm:$0xff]  ;;  %v653_v14 = vld [vmem:[%s1755_s13 + $0x10] sm:$0xff] }
  0x25   :  { %1078 = vmatprep.subr.msk.bf16.mxu0 %vm1077_vm2, %v1076_v51  ;;  %v572_v31 = vld [vmem:[%s1756_s14] sm:$0xff]  ;;  %v1110_v32 = vpack.c.bf16 %v300_v30, %v299_v29  ;;  %v486_v63 = vld [vmem:[%s1753_s11 + $0x8] sm:$0xff] }
  0x26   :  { %v1119_v34 = vpack.c.bf16 %v573_v33, %v572_v31  ;;  %v298_v35 = vld [vmem:[%s1774_s30] sm:$0xff]  ;;  %v664_v29 = vld [vmem:[%s1755_s13 + $0x68] sm:$0xff]  ;;  %v665_v31 = vld [vmem:[%s1755_s13 + $0x70] sm:$0xff] }
  0x27   :  { %1096 = vmatpush1.bf16.msra.mxu1 %v1095_v59  ;;  %304 = vperm.xlu0 %1181, %v298_v35   ;;  %v896_v37 = vld [vmem:[%s1747_s5] ss:$0 sm:$0xff]  ;;  %v747_v35 = vld [vmem:[%s1758_s16 + $0x8] sm:$0xff] }
  0x28   :  { %1081 = vmatpush1.bf16.msk.msra.mxu0 %vm1077_vm2, %v1079_v55  ;;  %1097 = vmatprep.subr.bf16.mxu1 %v1269_v13  ;;  %v399_v45 = vld [vmem:[%s1751_s9] sm:$0xff] }
  0x29   :  { %1109 = vmatprep.subr.bf16.mxu0 %v1269_v13  ;;  %v1113_v47 = vpack.c.bf16 %v400_v46, %v399_v45  ;;  %v898_v48 = vld [vmem:[%s1749_s7] ss:$0 sm:$0xff] }
  0x2a   :  { %v900_v52 = vld [vmem:[%s1750_s8] ss:$0 sm:$0xff] }
  0x2b   :  { %895 = vmatmul.mubr.msk.f32.vlgmr.msra.gmra.mrb[0].mxu0 %vm105_vm3, %v64_v56  ;;  %1099 = vmatpush1.bf16.msra.mxu1 %v1098_v62  ;;  %v485_v62 = vld [vmem:[%s1753_s11] sm:$0xff] }
  0x2c   :  { %1100 = vmatprep.subr.bf16.mxu1 %v1269_v13  ;;  %1111 = vmatpush3.bf16.msra.mxu0 %v1110_v32  ;;  %v1116_v0 = vpack.c.bf16 %v486_v63, %v485_v62  ;;  %v651_v6 = vld [vmem:[%s1755_s13] sm:$0xff]  ;;  %v666_v32 = vld [vmem:[%s1755_s13 + $0x78] sm:$0xff]  ;;  %v760_v63 = vld [vmem:[%s1758_s16 + $0x70] sm:$0xff] }
  0x2d   :  { %1112 = vmatprep.subr.bf16.mxu0 %v1269_v13  ;;  %960 = vmatprep.mubr.msk.f32.mxu0 %vm1271_vm5, %v1268_v7  ;;  %v1143_v33 = vpack.c.bf16 %v666_v32, %v665_v31 }
  0x2f   :  { %1102 = vmatpush1.bf16.msra.mxu1 %v1101_v1  ;;  %v901_v1 = vld [vmem:[%s1752_s10] ss:$0 sm:$0xff] }
  0x30   :  { %1103 = vmatprep.subr.bf16.mxu1 %v1269_v13 }
  0x33   :  { %1105 = vmatpush1.bf16.msra.mxu1 %v1104_v4 }
  0x34   :  { %1106 = vmatprep.subr.bf16.mxu1 %v1269_v13 }
  0x37   :  { %1108 = vmatpush1.bf16.msra.mxu1 %v1107_v8  ;;  %v652_v8 = vld [vmem:[%s1755_s13 + $0x8] sm:$0xff] }
  0x38   :  { %1118 = vmatprep.subr.bf16.mxu1 %v1269_v13  ;;  %v1122_v11 = vpack.c.bf16 %v652_v8, %v651_v6 }
  0xa6   :  { %v305_v49 = vpop.permute.xlu0 %304 }
  0xa7   :  { %v313_v50 = vmul.f32 %v898_v48, %v305_v49 }
  0xfe   :  { %v182_v17 = vpop.f32.mrb[0].mxu0 }
  0xff   :  { %v183_v18 = vadd.f32 %v182_v17, %v98_v15  ;;  %v184_v19 = vpop.f32.mrb[1].mxu0  ;;  %v654_v15 = vld [vmem:[%s1755_s13 + $0x18] sm:$0xff]  ;;  %v655_v17 = vld [vmem:[%s1755_s13 + $0x20] sm:$0xff] }
 0x100   :  { %v185_v20 = vadd.f32 %v184_v19, %v102_v16  ;;  %v1125_v16 = vpack.c.bf16 %v654_v15, %v653_v14 }
 0x101   :  { %v187_v21 = vmul.f32 0.5, %v183_v18  ;;  %v656_v18 = vld [vmem:[%s1755_s13 + $0x28] sm:$0xff] }
 0x102   :  { %v188_v22 = vmul.f32 0.5, %v185_v20  ;;  %v1128_v19 = vpack.c.bf16 %v656_v18, %v655_v17  ;;  %v658_v20 = vld [vmem:[%s1755_s13 + $0x38] sm:$0xff] }
 0x103   :  { %1182 = vtanh.f32 %v187_v21 }
 0x104   :  { %1184 = vtanh.f32 %v188_v22 }
 0x10d   :  { %v1183_v23 = vpop.eup %1182 }
 0x10e   :  { %v1185_v24 = vpop.eup %1184  ;;  %v191_v25 = vadd.f32 1.0, %v1183_v23  ;;  %v660_v23 = vld [vmem:[%s1755_s13 + $0x48] sm:$0xff] }
 0x10f   :  { %v192_v26 = vadd.f32 1.0, %v1185_v24 }
 0x110   :  { %v193_v28 = vmul.f32 %v191_v25, %v187_v21  ;;  %v661_v25 = vld [vmem:[%s1755_s13 + $0x50] sm:$0xff] }
 0x111   :  { %v194_v27 = vmul.f32 %v192_v26, %v188_v22  ;;  %v659_v22 = vld [vmem:[%s1755_s13 + $0x40] sm:$0xff]  ;;  %v662_v26 = vld [vmem:[%s1755_s13 + $0x58] sm:$0xff] }
 0x112   :  { %v1134_v24 = vpack.c.bf16 %v660_v23, %v659_v22 }
 0x113   :  { %897 = vmatprep.mubr.msk.f32.mxu1 %vm220_vm4, %v194_v27  ;;  %v1137_v27 = vpack.c.bf16 %v662_v26, %v661_v25 }
 0x114   :  { %289 = vmatmul.mubr.f32.vlgmr.msra.gmra.mrb[0].mxu1 %v193_v28  ;;  %v663_v28 = vld [vmem:[%s1755_s13 + $0x60] sm:$0xff] }
 0x115   :  { %1120 = vmatpush3.bf16.msra.mxu1 %v1119_v34  ;;  %981 = vmatprep.mubr.msk.f32.mxu1 %vm1271_vm5, %v1268_v7  ;;  %v1140_v30 = vpack.c.bf16 %v664_v29, %v663_v28  ;;  %v746_v34 = vld [vmem:[%s1758_s16] sm:$0xff] }
 0x116   :  { %v1145_v36 = vpack.c.bf16 %v747_v35, %v746_v34 }
 0x118   :  { %1146 = vmatprep.subr.bf16.mxu1 %v1145_v36 }
 0x1e7   :  { %v290_v38 = vpop.f32.mrb[0].mxu1 }
 0x1e8   :  { %v291_v39 = vadd.f32 %v896_v37, %v290_v38  ;;  %v292_v40 = vpop.f32.mrb[1].mxu1  ;;  %v749_v37 = vld [vmem:[%s1758_s16 + $0x18] sm:$0xff] }
 0x1e9   :  { %v751_v40 = vld [vmem:[%s1758_s16 + $0x28] sm:$0xff] }
 0x1ea   :  { %v294_v41 = vmul.f32 0.5, %v291_v39  ;;  %v750_v39 = vld [vmem:[%s1758_s16 + $0x20] sm:$0xff] }
 0x1ec   :  { %1186 = vtanh.f32 %v294_v41 }
 0x1f6   :  { %v1187_v42 = vpop.eup %1186 }
 0x1f7   :  { %v296_v43 = vadd.f32 1.0, %v1187_v42  ;;  %v903_v42 = vld [vmem:[%s1754_s12] ss:$0 sm:$0xff] }
 0x1f9   :  { %v297_v44 = vmul.f32 %v296_v43, %v294_v41  ;;  %v1153_v41 = vpack.c.bf16 %v751_v40, %v750_v39 }
 0x1fb   :  { %961 = vmatmul.mubr.msk.f32.vlgmr.msra.gmra.mrb[2].mxu0 %vm220_vm4, %v297_v44  ;;  %982 = vmatmul.mubr.msk.f32.vlgmr.msra.gmra.mrb[2].mxu1 %vm220_vm4, %v297_v44 }
 0x1fc   :  { %967 = vmatprep.mubr.msk.f32.mxu0 %vm1271_vm5, %v1268_v7  ;;  %1114 = vmatpush3.bf16.msra.mxu0 %v1113_v47 }
 0x1fd   :  { %1115 = vmatprep.subr.bf16.mxu0 %v1269_v13  ;;  %1148 = vmatpush3.bf16.msra.mxu1 %v1145_v36 }
 0x2ce   :  { %v383_v51 = vpop.f32.mrb[2].mxu0  ;;  %v1578_v53 = vpop.f32.mrb[2].mxu1 }
 0x2cf   :  { %v384_v54 = vadd.f32 %v383_v51, %v313_v50  ;;  %v962_v55 = vpop.f32.mrb[3].mxu0  ;;  %v983_v56 = vpop.f32.mrb[3].mxu1  ;;  %v752_v50 = vld [vmem:[%s1758_s16 + $0x30] sm:$0xff]  ;;  %v753_v51 = vld [vmem:[%s1758_s16 + $0x38] sm:$0xff] }
 0x2d0   :  { %v755_v55 = vld [vmem:[%s1758_s16 + $0x48] sm:$0xff] }
 0x2d1   :  { %v394_v57 = vadd.f32 %v900_v52, %v384_v54  ;;  %v1157_v52 = vpack.c.bf16 %v753_v51, %v752_v50  ;;  %v754_v54 = vld [vmem:[%s1758_s16 + $0x40] sm:$0xff] }
 0x2d2   :  { %v1161_v56 = vpack.c.bf16 %v755_v55, %v754_v54 }
 0x2d3   :  { %v395_v58 = vmul.f32 0.5, %v394_v57  ;;  %v756_v57 = vld [vmem:[%s1758_s16 + $0x50] sm:$0xff] }
 0x2d5   :  { %1188 = vtanh.f32 %v395_v58 }
 0x2df   :  { %v1189_v59 = vpop.eup %1188 }
 0x2e0   :  { %v397_v60 = vadd.f32 1.0, %v1189_v59 }
 0x2e2   :  { %v398_v61 = vmul.f32 %v397_v60, %v395_v58  ;;  %v757_v58 = vld [vmem:[%s1758_s16 + $0x58] sm:$0xff]  ;;  %v758_v60 = vld [vmem:[%s1758_s16 + $0x60] sm:$0xff] }
 0x2e3   :  { %v1165_v59 = vpack.c.bf16 %v757_v58, %v756_v57 }
 0x2e4   :  { %968 = vmatmul.mubr.msk.f32.vlgmr.msra.gmra.mrb[4].mxu0 %vm220_vm4, %v398_v61  ;;  %v759_v61 = vld [vmem:[%s1758_s16 + $0x68] sm:$0xff] }
 0x2e5   :  { %974 = vmatprep.mubr.msk.f32.mxu0 %vm1271_vm5, %v1268_v7  ;;  %1117 = vmatpush3.bf16.msra.mxu0 %v1116_v0  ;;  %v1169_v62 = vpack.c.bf16 %v759_v61, %v758_v60  ;;  %v905_v0 = vld [vmem:[%s1757_s15] ss:$0 sm:$0xff] }
 0x2e6   :  { %1121 = vmatprep.subr.bf16.mxu0 %v1269_v13 }
 0x3b7   :  { %v477_v2 = vpop.f32.mrb[4].mxu0 }
 0x3b8   :  { %v478_v3 = vadd.f32 %v901_v1, %v477_v2  ;;  %v969_v4 = vpop.f32.mrb[5].mxu0  ;;  %v648_v1 = vadd.f32 %v905_v0, %v1578_v53 }
 0x3ba   :  { %v481_v5 = vmul.f32 0.5, %v478_v3  ;;  %v742_v2 = vmul.f32 0.5, %v648_v1 }
 0x3bc   :  { %1190 = vtanh.f32 %v481_v5 }
 0x3c6   :  { %v1191_v9 = vpop.eup %1190 }
 0x3c7   :  { %v483_v10 = vadd.f32 1.0, %v1191_v9 }
 0x3c9   :  { %v484_v12 = vmul.f32 %v483_v10, %v481_v5 }
 0x3cb   :  { %975 = vmatmul.mubr.msk.f32.vlgmr.msra.gmra.mrb[6].mxu0 %vm220_vm4, %v484_v12 }
 0x3cc   :  { %1123 = vmatpush3.bf16.msra.mxu0 %v1122_v11  ;;  %1016 = vmatprep.mubr.msk.f32.mxu0 %vm1271_vm5, %v1268_v7  ;;  %v657_v7 = vld [vmem:[%s1755_s13 + $0x30] sm:$0xff] }
 0x3cd   :  { %1124 = vmatprep.subr.bf16.mxu0 %v1269_v13  ;;  %v1131_v21 = vpack.c.bf16 %v658_v20, %v657_v7 }
 0x3d0   :  { %1126 = vmatpush3.bf16.msra.mxu0 %v1125_v16 }
 0x3d1   :  { %1127 = vmatprep.subr.bf16.mxu0 %v1269_v13 }
 0x3d4   :  { %1129 = vmatpush3.bf16.msra.mxu0 %v1128_v19 }
 0x3d5   :  { %1130 = vmatprep.subr.bf16.mxu0 %v1269_v13 }
 0x3d8   :  { %1132 = vmatpush3.bf16.msra.mxu0 %v1131_v21 }
 0x3d9   :  { %1133 = vmatprep.subr.bf16.mxu0 %v1269_v13 }
 0x3dc   :  { %1135 = vmatpush3.bf16.msra.mxu0 %v1134_v24 }
 0x3dd   :  { %1136 = vmatprep.subr.bf16.mxu0 %v1269_v13 }
 0x3e0   :  { %1138 = vmatpush3.bf16.msra.mxu0 %v1137_v27 }
 0x3e1   :  { %1139 = vmatprep.subr.bf16.mxu0 %v1269_v13 }
 0x3e4   :  { %1141 = vmatpush3.bf16.msra.mxu0 %v1140_v30 }
 0x3e5   :  { %1142 = vmatprep.subr.bf16.mxu0 %v1269_v13  ;;  %v748_v13 = vld [vmem:[%s1758_s16 + $0x10] sm:$0xff]  ;;  %s1273_s16 = smov [#allocation2]  }
 0x3e6   :  { %v1149_v38 = vpack.c.bf16 %v749_v37, %v748_v13  ;;  %s858_s15 = sshll.u32 %s1273_s16, 4  ;;  %s859_s15 = int_to_ptr.vmem [resolvable:$true] %s858_s15 }
 0x3e7   :  { %s1198_s7 = scalar_lea.vmem %s859_s15, 128  ;;  %p1203_p1 = scmp.lt.s32.totalorder %s859_s15, %s859_s15 }
 0x3e8   :  { %1144 = vmatpush3.bf16.msra.mxu0 %v1143_v33  ;;  %1150 = vmatprep.subr.bf16.mxu1 %v1149_v38  ;;  %p1199_p0 = scmp.ne.s32.totalorder %s859_s15, %s1198_s7  ;;  %p1204_p2 = scmp.lt.s32.totalorder %s1198_s7, %s1198_s7 }
 0x3e9   :  { %1152 = vmatpush3.bf16.msra.mxu1 %v1149_v38 }
 0x3ea   :  { %1154 = vmatprep.subr.bf16.mxu1 %v1153_v41  ;;  %p1205_p3 = por %p1204_p2, %p1203_p1 }
 0x3ec   :  { %p1206_p4 = pnand %p1205_p3, %p1199_p0 }
 0x3ed   :  { %1156 = vmatpush3.bf16.msra.mxu1 %v1153_v41 }
 0x3ee   :  { %1158 = vmatprep.subr.bf16.mxu1 %v1157_v52 }
 0x3f1   :  { %1160 = vmatpush3.bf16.msra.mxu1 %v1157_v52 }
 0x3f2   :  { %1162 = vmatprep.subr.bf16.mxu1 %v1161_v56 }
 0x3f5   :  { %1164 = vmatpush3.bf16.msra.mxu1 %v1161_v56 }
 0x3f6   :  { %1166 = vmatprep.subr.bf16.mxu1 %v1165_v59 }
 0x3f9   :  { %1168 = vmatpush3.bf16.msra.mxu1 %v1165_v59 }
 0x3fa   :  { %1170 = vmatprep.subr.bf16.mxu1 %v1169_v62 }
 0x3fd   :  { %1172 = vmatpush3.bf16.msra.mxu1 %v1169_v62 }
 0x3fe   :  { %1047 = vmatprep.subr.mxu1 %v760_v63 }
 0x401   :  { %1048 = vmatpush3.msra.mxu1 %v760_v63 }
 0x49e   :  { %v563_v43 = vpop.f32.mrb[6].mxu0 }
 0x49f   :  { %v564_v44 = vadd.f32 %v903_v42, %v563_v43  ;;  %v976_v45 = vpop.f32.mrb[7].mxu0 }
 0x4a1   :  { %v567_v46 = vmul.f32 0.5, %v564_v44 }
 0x4a3   :  { %1192 = vtanh.f32 %v567_v46 }
 0x4a4   :  { %1194 = vtanh.f32 %v742_v2 }
 0x4ad   :  { %v1193_v47 = vpop.eup %1192 }
 0x4ae   :  { %v569_v48 = vadd.f32 1.0, %v1193_v47  ;;  %v1195_v8 = vpop.eup %1194 }
 0x4af   :  { %v744_v10 = vadd.f32 1.0, %v1195_v8 }
 0x4b0   :  { %v570_v49 = vmul.f32 %v569_v48, %v567_v46 }
 0x4b1   :  { %v745_v14 = vmul.f32 %v744_v10, %v742_v2 }
 0x4b2   :  { %571 = vst [vmem:[#allocation2] sm:$0xff] %v570_v49  ;;  %1017 = vmatmul.mubr.f32.vlgmr.msra.gmra.mrb[8].mxu0 %v570_v49 }
 0x585   :  { %v733_v3 = vpop.f32.mrb[8].mxu0 }
 0x586   :  { %v737_v4 = vadd.f32 %v733_v3, %v648_v1  ;;  %v1018_v5 = vpop.f32.mrb[9].mxu0 }
 0x588   :  { %v738_v6 = vmul.f32 0.5, %v737_v4 }
 0x58a   :  { %1196 = vtanh.f32 %v738_v6 }
 0x594   :  { %v1197_v9 = vpop.eup %1196 }
 0x595   :  { %v740_v11 = vadd.f32 1.0, %v1197_v9 }
 0x597   :  { %v741_v12 = vmul.f32 %v740_v11, %v738_v6 }
 0x599   :  { %1049 = vmatprep.mubr.msk.f32.mxu1 %vm768_vm6, %v741_v12 }
 0x59a   :  { %1050 = vmatmul.mubr.msk.f32.vlgmr.msra.gmra.mrb[4].mxu1 %vm768_vm6, %v745_v14 }
 0x59b   :  { %1209 = shalt.err (!%p1206_p4)
}
 0x59c   :  { %s1210_s3 = scalar_lea.hbm %s1760_s18, 128 }
 0x59d   :  { %p1211_p5 = scmp.ne.s32.totalorder %s1760_s18, %s1210_s3  ;;  %p1214_p6 = scmp.lt.u32.totalorder %s1210_s3, %s1760_s18 }
 0x59f   :  { %p1216_p7 = pnand %p1214_p6, %p1211_p5 }
 0x5a1   :  { %1219 = shalt.err (!%p1216_p7)
}
 0x5a2   :  { %861 = dma.vmem_to_hbm [thread:$0]  %s859_s15, 128, %s1760_s18, [#allocation3]   ;;  %v907_v53 = vld [vmem:[%s1759_s17] ss:$0 sm:$0xff] }
 0x5a3   :  { %s1274_s30 = smov [#allocation4]   ;;  %s1275_s14 = smov [#allocation6]  }
 0x5a4   :  { %s868_s10 = sshll.u32 %s1274_s30, 4  ;;  %s878_s0 = sshll.u32 %s1275_s14, 4  ;;  %s869_s10 = int_to_ptr.vmem [resolvable:$true] %s868_s10  ;;  %s879_s0 = int_to_ptr.vmem [resolvable:$true] %s878_s0 }
 0x5a5   :  { %s1220_s21 = scalar_lea.vmem %s869_s10, 128  ;;  %p1225_p9 = scmp.lt.s32.totalorder %s869_s10, %s869_s10 }
 0x5a6   :  { %p1221_p8 = scmp.ne.s32.totalorder %s869_s10, %s1220_s21  ;;  %p1226_p10 = scmp.lt.s32.totalorder %s1220_s21, %s1220_s21 }
 0x5a8   :  { %p1227_p11 = por %p1226_p10, %p1225_p9 }
 0x5aa   :  { %p1228_p12 = pnand %p1227_p11, %p1221_p8 }
 0x66d   :  { %v1051_v15 = vpop.f32.mrb[4].mxu1 }
 0x66e   :  { %v847_v16 = vadd.f32 %v1051_v15, %v907_v53  ;;  %v841_v17 = vpop.f32.mrb[5].mxu1 }
 0x66f   :  { %v842_v18 = vadd.f32 %v907_v53, %v841_v17 }
 0x670   :  { %851 = vst [vmem:[#allocation6] sm:$0xff] %v847_v16 }
 0x671   :  { %850 = vst [vmem:[#allocation4] sm:$0xff] %v842_v18 }
 0x672   :  { %1231 = shalt.err (!%p1228_p12)
}
 0x673   :  { %s1232_s1 = scalar_lea.hbm %s1761_s19, 128 }
 0x674   :  { %p1233_p13 = scmp.ne.s32.totalorder %s1761_s19, %s1232_s1  ;;  %p1236_p0 = scmp.lt.u32.totalorder %s1232_s1, %s1761_s19 }
 0x676   :  { %p1238_p1 = pnand %p1236_p0, %p1233_p13 }
 0x678   :  { %1241 = shalt.err (!%p1238_p1)
}
 0x679   :  { %871 = dma.vmem_to_hbm [thread:$0]  %s869_s10, 128, %s1761_s19, [#allocation5]  }
 0x67a   :  { %s1242_s13 = scalar_lea.vmem %s879_s0, 128  ;;  %p1247_p3 = scmp.lt.s32.totalorder %s879_s0, %s879_s0 }
 0x67b   :  { %p1243_p2 = scmp.ne.s32.totalorder %s879_s0, %s1242_s13  ;;  %p1248_p4 = scmp.lt.s32.totalorder %s1242_s13, %s1242_s13 }
 0x67d   :  { %p1249_p5 = por %p1248_p4, %p1247_p3 }
 0x67f   :  { %p1250_p6 = pnand %p1249_p5, %p1243_p2 }
 0x681   :  { %1253 = shalt.err (!%p1250_p6)
}
 0x682   :  { %s1254_s7 = scalar_lea.hbm %s1762_s20, 128 }
 0x683   :  { %p1255_p7 = scmp.ne.s32.totalorder %s1762_s20, %s1254_s7  ;;  %p1258_p8 = scmp.lt.u32.totalorder %s1254_s7, %s1762_s20 }
 0x685   :  { %p1260_p9 = pnand %p1258_p8, %p1255_p7 }
 0x687   :  { %1263 = shalt.err (!%p1260_p9)
}
 0x688   :  { %881 = dma.vmem_to_hbm [thread:$0]  %s879_s0, 128, %s1762_s20, [#allocation5]  }
 0x689   :  { %1264 = dma.done.wait [#allocation3], 128  }
 0x68a   :  { %1265 = vsyncadd [#allocation3], 4294967168 }
 0x68b   :  { %1266 = dma.done.wait [#allocation5], 256  }
 0x68c   :  { %1267 = vsyncadd [#allocation5], 4294967040 }
 0x68d   :  { %891 = vsyncpa [#allocation3], 1 }
 0x68e   :  { %892 = vsyncpa [#allocation5], 1 }

</bundles_post_ra>
